<compile_context>
chip_gen: v5e
topology: v5e:2x2
jax: 0.10.0
libtpu: 0.0.40
codegen_flags: <defaults>
</compile_context>

<pallas_src>
import jax
import jax.numpy as jnp
import numpy as np
from jax.experimental import pallas as pl
from jax.experimental.pallas import tpu as pltpu


def _round_up(x, m):
    return ((x + m - 1) // m) * m


def _mymodel_kernel(xt_ref, wgt_ref, md_ref, out_ref):
    # xt_ref : (F, Bt)   batch tile of X^T (batch on the lane axis)
    # wgt_ref: (2P, F)   pre-folded per-class group weights (resident)
    # md_ref : (1, 2P)   [-M[0, :], +M[1, :]]                  (resident)
    # out_ref: (2, Bt)   row 0 = p(class 0), row 1 = p(class 1)
    z = jnp.dot(wgt_ref[...], xt_ref[...],
                preferred_element_type=jnp.float32)            # (2P, Bt) MXU
    t = jnp.tanh(z)                                            # f32 (EUP)
    d = jnp.dot(md_ref[...], t,
                preferred_element_type=jnp.float32)            # (1, Bt) = f1 - f0
    p0 = 1.0 / (1.0 + jnp.exp(d))                              # exp(f0)/(exp(f0)+exp(f1))
    out_ref[...] = jnp.concatenate([p0, 1.0 - p0], axis=0).astype(out_ref.dtype)


def my_model_forward(numerical_x, categorical_x, icd_x, W, M,
                     *, batch_tile=512, compute_dtype=jnp.float32):
    """JAX/Pallas equivalent of myModel.forward.  Returns prob of shape (2, B)."""
    xs = list(numerical_x) + list(categorical_x) + list(icd_x)
    sizes = [int(x.shape[1]) for x in xs]
    B = int(xs[0].shape[0])
    F = int(sum(sizes))
    P = len(xs)
    assert W.shape == (2, F) and M.shape == (2, P)

    # ---- wrapper-side glue (plain XLA layout plumbing, not in the kernel) ----
    X = jnp.concatenate([x.astype(jnp.float32) for x in xs], axis=1)      # (B, F)
    XT = X.T                                                              # (F, B)

    # Pre-fold W into the one-hot feature->group map:
    #   WgT[c*P + j, f] = W[c, f] if feature f belongs to group j else 0.
    g_np = np.zeros((P, F), dtype=np.float32)
    k = 0
    for j, n in enumerate(sizes):
        g_np[j, k:k + n] = 1.0
        k += n
    GT = jnp.asarray(g_np)                                                # (P, F)
    Wf = W.astype(jnp.float32)
    WgT = jnp.concatenate([GT * Wf[0][None, :], GT * Wf[1][None, :]],
                          axis=0)                                         # (2P, F)

    Mf = M.astype(jnp.float32)
    md = jnp.concatenate([-Mf[0], Mf[1]], axis=0)[None, :]                # (1, 2P)

    # Lane-dense batch tiles (multiple of 128), zero-padded batch.
    Bt = _round_up(int(min(batch_tile, _round_up(B, 128))), 128)
    B_pad = pl.cdiv(B, Bt) * Bt
    if B_pad != B:
        XT = jnp.pad(XT, ((0, 0), (0, B_pad - B)))

    # Optional bf16 matmul operands (f32 accumulation via preferred_element_type).
    XT = XT.astype(compute_dtype)
    WgT = WgT.astype(compute_dtype)

    grid = (B_pad // Bt,)

    # Explicit (conservative) VMEM budget: double-buffered in/out tiles +
    # resident weights + headroom; capped well under v7x's 64 MiB VMEM.
    itemsize = jnp.dtype(compute_dtype).itemsize
    tile_bytes = F * Bt * itemsize + 2 * Bt * 4
    resident_bytes = 2 * P * F * itemsize + 2 * P * 4
    vmem_limit = int(min(max(4 * tile_bytes + resident_bytes + (2 << 20),
                             16 << 20), 32 << 20))

    out = pl.pallas_call(
        _mymodel_kernel,
        out_shape=jax.ShapeDtypeStruct((2, B_pad), jnp.float32),
        grid=grid,
        in_specs=[
            pl.BlockSpec((F, Bt), lambda i: (0, i)),        # X^T batch tile (pipelined)
            pl.BlockSpec((2 * P, F), lambda i: (0, 0)),     # folded weights (resident)
            pl.BlockSpec((1, 2 * P), lambda i: (0, 0)),     # M diff row    (resident)
        ],
        out_specs=pl.BlockSpec((2, Bt), lambda i: (0, i)),  # lane-dense output block
        compiler_params=pltpu.CompilerParams(
            dimension_semantics=("parallel",),
            vmem_limit_bytes=vmem_limit,
        ),
    )(XT, WgT, md)

    return out[:, :B]   # (2, B) — same layout as the PyTorch module, no transpose


def reference_forward(numerical_x, categorical_x, icd_x, W, M):
    """Pure-JAX line-by-line port of the PyTorch loop, for verification."""
    outputs = []
    k = 0
    j = 0
    for x in numerical_x:
        out = W[:, k:k + 1] @ x.T
        out = jnp.tanh(out)
        out = M[:, j].reshape(2, 1) * out
        outputs.append(out)
        k += 1
        j += 1
    for x in categorical_x:
        n = x.shape[1]
        out = W[:, k:k + n] @ x.T
        out = jnp.tanh(out)
        out = M[:, j].reshape(2, 1) * out
        outputs.append(out)
        k += n
        j += 1
    for x in icd_x:
        out = W[:, k:k + 1] @ x.T
        out = jnp.tanh(out)
        out = M[:, j].reshape(2, 1) * out
        outputs.append(out)
        k += 1
        j += 1
    f = jnp.zeros_like(outputs[0])
    for out in outputs:
        f = f + out
    f = jnp.exp(f)
    f_sum = jnp.sum(f, 0)
    return f / f_sum


if __name__ == "__main__":
    key = jax.random.PRNGKey(0)
    # B deliberately not a multiple of 128 to exercise batch padding; tile of
    # 128 gives a 2-step parallel grid.
    B = 250

    # 3 numerical features (B, 1), 2 categorical groups (B, 4) / (B, 3),
    # 2 icd features (B, 1)  -> n_feature = 12, n_phenotype = 7.
    k_num0, k_num1, k_num2, k_cat0, k_cat1, k_icd0, k_icd1, k_W, k_M = \
        jax.random.split(key, 9)
    numerical_x = [
        jax.random.normal(k_num0, (B, 1), jnp.float32),
        jax.random.normal(k_num1, (B, 1), jnp.float32),
        jax.random.normal(k_num2, (B, 1), jnp.float32),
    ]
    categorical_x = [
        jax.random.normal(k_cat0, (B, 4), jnp.float32),
        jax.random.normal(k_cat1, (B, 3), jnp.float32),
    ]
    icd_x = [
        jax.random.normal(k_icd0, (B, 1), jnp.float32),
        jax.random.normal(k_icd1, (B, 1), jnp.float32),
    ]

    n_feature = sum(x.shape[1] for x in numerical_x + categorical_x + icd_x)
    n_phenotype = len(numerical_x) + len(categorical_x) + len(icd_x)

    # Deterministic parameter init (matches torch.randn shapes in __init__).
    W = jax.random.normal(k_W, (2, n_feature), jnp.float32)
    M = jax.random.normal(k_M, (2, n_phenotype), jnp.float32)

    # f32 matmul operands for exact verification; pass compute_dtype=jnp.bfloat16
    # on v6e/v7x for MXU throughput (f32 accumulation is kept either way).
    prob = my_model_forward(numerical_x, categorical_x, icd_x, W, M,
                            batch_tile=128, compute_dtype=jnp.float32)
    prob = jax.block_until_ready(prob)

    ref = reference_forward(numerical_x, categorical_x, icd_x, W, M)
    ref = jax.block_until_ready(ref)

    assert prob.shape == (2, B), prob.shape
    np.testing.assert_allclose(np.asarray(prob), np.asarray(ref),
                               rtol=1e-5, atol=1e-6)
    print("KERNEL_OK")
</pallas_src>

<mosaic_0001>
module attributes {stable_mosaic.version = 11 : i64} {
  func.func @_mymodel_kernel(%arg0: i32, %arg1: memref<12x128xf32, #tpu.memory_space<vmem>>, %arg2: memref<14x12xf32, #tpu.memory_space<vmem>>, %arg3: memref<1x14xf32, #tpu.memory_space<vmem>>, %arg4: memref<2x128xf32, #tpu.memory_space<vmem>>) attributes {dimension_semantics = [#tpu.dimension_semantics<parallel>], iteration_bounds = array<i64: 2>, scalar_prefetch = 0 : i64, scratch_operands = 0 : i64, tpu.core_type = #tpu.core_type<tc>, window_params = [{transform_indices = @transform_0, window_bounds = array<i64: 12, 128>}, {pipeline_mode = #tpu.pipeline_mode<synchronous>, transform_indices = @transform_1, window_bounds = array<i64: 14, 12>}, {pipeline_mode = #tpu.pipeline_mode<synchronous>, transform_indices = @transform_2, window_bounds = array<i64: 1, 14>}, {transform_indices = @transform_3, window_bounds = array<i64: 2, 128>}]} {
    %c0 = arith.constant 0 : index
    %c0_0 = arith.constant 0 : index
    %0 = vector.load %arg2[%c0, %c0_0] : memref<14x12xf32, #tpu.memory_space<vmem>>, vector<14x12xf32>
    %c0_1 = arith.constant 0 : index
    %c0_2 = arith.constant 0 : index
    %1 = vector.load %arg1[%c0_1, %c0_2] : memref<12x128xf32, #tpu.memory_space<vmem>>, vector<12x128xf32>
    %cst = arith.constant dense<0.000000e+00> : vector<14x128xf32>
    %2 = tpu.matmul %0, %1, %cst {dimension_numbers = #tpu.dot_dimension_numbers<[1], [0], [0], [1], [0, 0, 1, 1], [], []>} : vector<14x12xf32>, vector<12x128xf32>, vector<14x128xf32> -> vector<14x128xf32>
    %3 = math.tanh %2 : vector<14x128xf32>
    %c0_3 = arith.constant 0 : index
    %c0_4 = arith.constant 0 : index
    %4 = vector.load %arg3[%c0_3, %c0_4] : memref<1x14xf32, #tpu.memory_space<vmem>>, vector<1x14xf32>
    %cst_5 = arith.constant dense<0.000000e+00> : vector<1x128xf32>
    %5 = tpu.matmul %4, %3, %cst_5 {dimension_numbers = #tpu.dot_dimension_numbers<[1], [0], [0], [1], [0, 0, 1, 1], [], []>} : vector<1x14xf32>, vector<14x128xf32>, vector<1x128xf32> -> vector<1x128xf32>
    %6 = math.exp %5 : vector<1x128xf32>
    %cst_6 = arith.constant 1.000000e+00 : f32
    %7 = vector.broadcast %cst_6 : f32 to vector<1x128xf32>
    %8 = arith.addf %7, %6 : vector<1x128xf32>
    %cst_7 = arith.constant 1.000000e+00 : f32
    %9 = vector.broadcast %cst_7 : f32 to vector<1x128xf32>
    %10 = arith.divf %9, %8 : vector<1x128xf32>
    %cst_8 = arith.constant 1.000000e+00 : f32
    %11 = vector.broadcast %cst_8 : f32 to vector<1x128xf32>
    %12 = arith.subf %11, %10 : vector<1x128xf32>
    %13 = tpu.concatenate %10, %12 in 0 : vector<1x128xf32>, vector<1x128xf32> -> vector<2x128xf32>
    %c0_9 = arith.constant 0 : index
    %c0_10 = arith.constant 0 : index
    %14 = vector.load %arg4[%c0_9, %c0_10] : memref<2x128xf32, #tpu.memory_space<vmem>>, vector<2x128xf32>
    tpu.vector_store %arg4[%c0_9, %c0_10], %13 {strides = array<i32>} : memref<2x128xf32, #tpu.memory_space<vmem>>, vector<2x128xf32>,
    return
  }
  func.func @transform_0(%arg0: i32) -> (i32, i32) {
    %c0_i32 = arith.constant 0 : i32
    %c0_i32_0 = arith.constant 0 : i32
    return %c0_i32, %arg0 : i32, i32
  }
  func.func @transform_1(%arg0: i32) -> (i32, i32) {
    %c0_i32 = arith.constant 0 : i32
    %c0_i32_0 = arith.constant 0 : i32
    %c0_i32_1 = arith.constant 0 : i32
    return %c0_i32, %c0_i32_0 : i32, i32
  }
  func.func @transform_2(%arg0: i32) -> (i32, i32) {
    %c0_i32 = arith.constant 0 : i32
    %c0_i32_0 = arith.constant 0 : i32
    %c0_i32_1 = arith.constant 0 : i32
    return %c0_i32, %c0_i32_0 : i32, i32
  }
  func.func @transform_3(%arg0: i32) -> (i32, i32) {
    %c0_i32 = arith.constant 0 : i32
    %c0_i32_0 = arith.constant 0 : i32
    return %c0_i32, %arg0 : i32, i32
  }
}

</mosaic_0001>

<bundles_post_ra>
// kernel: tpu_custom_call.1
= control target key start
LH: loop header
LB: loop body
LE: loop exit
PB: predicated region body
PF: predicated region fallthrough
CT: control target
= control target key end

     0   :  { %8 = vsyncpa [#allocation3], 0  ;;  %s791_s0 = inlined_call_operand.hbm [shape: f32[12,256], index: 0, kind: input, shape index: {}]   ;;  %s792_s1 = inlined_call_operand.hbm [shape: f32[14,12], index: 1, kind: input, shape index: {}]   ;;  %s793_s2 = inlined_call_operand.vmem [shape: f32[1,14], index: 2, kind: input, shape index: {}]   ;;  %s794_s3 = inlined_call_operand.hbm [shape: f32[2,256], index: 3, kind: output, shape index: {}]  }
   0x1   :  { %10 = vsyncpa [#allocation3 + $0x1], 0 }
   0x2   :  { %11 = vsyncpa [#allocation6], 0 }
   0x3   :  { %12 = vsyncpa [#allocation4], 0 }
   0x4   :  { %14 = vsyncpa [#allocation4 + $0x1], 0  ;;  %s642_s12 = smov 0   ;;  %s644_s13 = smov 0  }
   0x5   :  { %s646_s14 = smov 0   ;;  %s648_s15 = smov 0  }
   0x6 LB: > { %s663_s16 = sadd.s32 4294967295, %s616_s15   ;;  %s397_s17 = sadd.s32 4294967294, %s616_s15   ;;  %s616_s15 = sphi %s648_s15, %s804_s15   ;;  %s612_s14 = sphi %s646_s14, %s803_s14   ;;  %s608_s13 = sphi %s644_s13, %s802_s13   ;;  %s604_s12 = sphi %s642_s12, %s801_s12  }
   0x7   : > { %p40_p0 = scmp.ne.s32.totalorder %s608_s13, %s604_s12  ;;  %p41_p1 = scmp.eq.s32.totalorder %s663_s16, 0 }
   0x8   : > { %p106_p2 = scmp.eq.s32.totalorder %s663_s16, 1  ;;  %p112_p3 = scmp.eq.s32.totalorder %s397_s17, 1 }
   0x9   : > { %p672_p4 = por %p41_p1, %p40_p0  ;;  %p398_p5 = scmp.ge.s32.totalorder %s616_s15, 1 }
   0xa   : > { %p677_p6 = por %p112_p3, %p40_p0  ;;  %p119_p7 = scmp.lt.s32.totalorder %s616_s15, 3 }
   0xb   : > { %s130_s22 = sshll.u32 %s792_s1, 4  ;;  %s618_s24 = smov [#allocation5]   ;;  %s131_s22 = int_to_ptr.hbm [resolvable:$true] %s130_s22 }
   0xc   : > { %p685_p8 = pnand %p398_p5, %p119_p7  ;;  %s132_s25 = sshll.u32 %s618_s24, 4  ;;  %s133_s25 = int_to_ptr.vmem [resolvable:$true] %s132_s25 }
   0xd   : > { %s695_s26 = sadd.s32 1, %s616_s15   ;;  %s619_s27 = smov 128  }
   0xe   : > { %p426_p9 = pneg %p685_p8  ;;  %s620_s28 = smov 8  }
   0xf   : > { %s24_s29 = ssub.s32 %s616_s15, %s695_s26  ;;  %s27_s30 = sadd.s32 1, %s612_s14 }
  0x10   : > { %p427_p10 = pnand %p426_p9, %p41_p1  ;;  %p25_p12 = scmp.eq.s32.totalorder %s24_s29, 0 }
  0x11   : > { %p34_p13 = scmp.ne.s32.totalorder %s612_s14, %s608_s13  ;;  %p35_p0 = scmp.eq.s32.totalorder %s616_s15, 0 }
  0x12   : > { %429 = dma.hbm_to_vmem [thread:$0]  (!%p427_p10), %s131_s22, 256, %s133_s25, [#allocation6], %s619_s27, %s619_s27, %s620_s28  }
  0x13   : > { %p439_p3 = scmp.lt.s32.totalorder %s616_s15, 2  ;;  %p36_p5 = por %p35_p0, %p34_p13 }
  0x14   : > { %s708_s4 = scalar_select %p25_p12, %s612_s14, %s27_s30  }
  0x15   : > { %p712_p7 = por %p106_p2, %p34_p13  ;;  %s149_s6 = sand.u32 1, %s612_s14  }
  0x16   : > { %s402_s7 = sshll.u32 %s616_s15, 3  ;;  %s401_s8 = sshll.u32 %s149_s6, 4 }
  0x17   : > { %s157_s11 = scalar_lea.hbm %s791_s0, %s402_s7  ;;  %s153_s20 = scalar_lea.vmem [#allocation2], %s401_s8 }
  0x18   : > { %s158_s17 = sshll.u32 %s157_s11, 4  ;;  %s160_s21 = sshll.u32 %s153_s20, 4  ;;  %s159_s17 = int_to_ptr.hbm [resolvable:$true] %s158_s17  ;;  %s161_s21 = int_to_ptr.vmem [resolvable:$true] %s160_s21 }
  0x19   : > { %p723_p9 = pnand %p439_p3, %p36_p5  ;;  %s150_s24 = scalar_lea.sflag [#allocation3], %s149_s6 }
  0x1a   : > { %s516_s25 = sshra.s32 %s159_s17, 4  ;;  %s523_s8 = scalar_lea.hbm %s791_s0, 32  ;;  %s517_s25 = int_to_ptr.hbm [resolvable:$true] %s516_s25 }
  0x1b   : > { %s518_s29 = scalar_lea.hbm %s517_s25, 16  ;;  %p520_p10 = pneg %p723_p9 }
  0x1c   : > { %p519_p2 = scmp.ne.s32.totalorder %s517_s25, %s518_s29  ;;  %p524_p0 = scmp.lt.s32.totalorder %s517_s25, %s791_s0 }
  0x1d   : > { %p525_p3 = scmp.lt.s32.totalorder %s523_s8, %s518_s29 }
  0x1e   : > { %p521_p12 = pnand %p520_p10, %p519_p2 }
  0x1f   : > { %p526_p5 = por %p525_p3, %p524_p0 }
  0x20   : > { %p522_p13 = pneg %p521_p12 }
  0x22   : > { %p527_p11 = pnand %p526_p5, %p522_p13 }
  0x24   : > { %530 = shalt.err (!%p527_p11)
}
  0x25   : > { %s621_s6 = smov 256   ;;  %172 = sbr.rel (%p685_p8) target bundleno = 353 (0x161), region = 32 }
  0x26   : > { %433 = dma.hbm_to_vmem [thread:$0]  (!%p723_p9), %s159_s17, 256, %s161_s21, %s150_s24, %s621_s6, %s619_s27, %s620_s28  }
  0x27   : > { %s742_s11 = sand.u32 (!%p685_p8), 1, %s608_s13  }
  0x28   : > { %s404_s20 = sshll.u32 (!%p685_p8), %s742_s11, 4  ;;  %s175_s25 = scalar_lea.sflag (!%p685_p8), [#allocation3], %s742_s11 }
  0x29   : > { %s178_s29 = scalar_lea.vmem (!%p685_p8), [#allocation2], %s404_s20 }
  0x2a   : > { %591 = dma.done.wait (%p672_p4), %s175_s25, 256  }
  0x2b   : > { %593 = vsyncadd (%p672_p4), %s175_s25, 4294967040 }
  0x2c   : > { %595 = dma.done.wait (%p41_p1), [#allocation6], 256  }
  0x2d   : > { %597 = vsyncadd (%p41_p1), [#allocation6], 4294967040  ;;  %vm218_vm0 = vcmask 1043456   ;;  %v210_v0 = vld [vmem:[%s178_s29 + $0x8] sm:$0xf]  ;;  %v209_v1 = vld [vmem:[%s178_s29] sm:$0xff] }
  0x2e   : > { %416 = vmatpush.msk.msra.mxu2 %vm218_vm0, %v210_v0  ;;  %v208_v2 = vld [vmem:[#allocation5 + $0x8] sm:$0x3f]  ;;  %vm211_vm1 = vcmask 97280   ;;  %407 = vmatpush.msk.msra.mxu0 %vm218_vm0, %v210_v0  ;;  %v207_v3 = vld [vmem:[#allocation5] sm:$0xff]  ;;  %vm252_vm2 = vcmask 1045504   ;;  %vm248_vm3 = vcmask 113664  }
  0x2f   : > { %v247_v8 = vld [vmem:[%s793_s2] sm:$0x1]  ;;  %s406_s27 = sshll.u32 %s742_s11, 1  ;;  %s413_s28 = sshll.u32 %s663_s16, 1  ;;  %vm298_vm8 = vcmask 1040384  }
  0x30   : > { %417 = vmatpush.msra.mxu2 %v209_v1  ;;  %237 = vmatpush.msra.mxu0 %v209_v1  ;;  %s312_s22 = scalar_lea.hbm %s794_s3, %s413_s28  ;;  %s206_s24 = scalar_lea.vmem [#allocation7], %s406_s27 }
  0x31   : > { %409 = vmatmul.msk.f32.vlgmr.msra.gmra.mxu2 %vm211_vm1, %v208_v2  ;;  %408 = vmatmul.msk.f32.vlgmr.msra.gmra.mxu0 %vm211_vm1, %v207_v3  ;;  %s314_s30 = sshll.u32 %s206_s24, 4  ;;  %s316_s7 = sshll.u32 %s312_s22, 4  ;;  %s315_s30 = int_to_ptr.vmem [resolvable:$true] %s314_s30  ;;  %s317_s7 = int_to_ptr.hbm [resolvable:$true] %s316_s7 }
  0x32   : > { %s302_s16 = scalar_lea.sflag [#allocation4], %s742_s11  ;;  %s560_s8 = sshra.s32 %s317_s7, 4  ;;  %s561_s8 = int_to_ptr.hbm [resolvable:$true] %s560_s8 }
  0x33   : > { %s562_s9 = scalar_lea.hbm %s561_s8, 2  ;;  %s566_s20 = scalar_lea.hbm %s794_s3, 4 }
  0x34   : > { %p563_p1 = scmp.ne.s32.totalorder %s561_s8, %s562_s9  ;;  %p567_p11 = scmp.lt.s32.totalorder %s561_s8, %s794_s3 }
  0x35   : > { %p568_p9 = scmp.lt.s32.totalorder %s566_s20, %s562_s9 }
  0x36   : > { %p564_p4 = pnand %p563_p1, %p712_p7 }
  0x37   : > { %p569_p2 = por %p568_p9, %p567_p11 }
  0x38   : > { %p565_p8 = pneg %p564_p4 }
  0x3a   : > { %p570_p10 = pnand %p569_p2, %p565_p8 }
  0xae   : > { %v239_v4 = vpop.f32.mrf.mxu0 }
  0xaf   : > { %478 = vtanh.f32 %v239_v4 }
  0xb4   : > { %v242_v5 = vpop.f32.mrf.mxu2 }
  0xb5   : > { %480 = vtanh.f32 %v242_v5  ;;  %v479_v6 = vpop.eup %478 }
  0xbb   : > { %v481_v7 = vpop.eup %480 }
  0xbc   : > { %410 = vmatpush.msk.msra.mxu1 %vm252_vm2, %v481_v7 }
  0xbe   : > { %271 = vmatpush.msra.mxu1 %v479_v6 }
  0xbf   : > { %411 = vmatmul.msk.f32.vlgmr.msra.gmra.mxu1 %vm248_vm3, %v247_v8 }
 0x13c   : > { %v273_v9 = vpop.f32.mrf.mxu1 }
 0x13d   : > { %v276_v10 = vmul.f32 1.442695, %v273_v9 }
 0x13f   : > { %482 = vpow2.f32 %v276_v10 }
 0x145   : > { %v483_v11 = vpop.eup %482 }
 0x146   : > { %v278_v12 = vadd.f32 1.0, %v483_v11 }
 0x148   : > { %484 = vrcp.f32 %v278_v12  ;;  %v290_v16 = vand.u32 2147483648, %v278_v12  ;;  %v288_v18 = vand.u32 2147483647, %v278_v12  ;;  %vm284_vm5 = vweird.f32 %v278_v12 }
 0x14a   : > { %v291_v20 = vor.u32 1.1754944e-38, %v290_v16  ;;  %vm289_vm7 = vcmp.eq.f32.partialorder %v288_v18, 8.507059e+37 }
 0x14e   : > { %v485_v13 = vpop.eup %484 }
 0x14f   : > { %v280_v14 = vmul.f32 %v485_v13, %v278_v12  ;;  %vm285_vm4 = vweird.f32 %v485_v13 }
 0x150   : > { %vm286_vm6 = vmor %vm284_vm5, %vm285_vm4 }
 0x151   : > { %v281_v15 = vsub.f32 1.0, %v280_v14 }
 0x153   : > { %v282_v17 = vmul.f32 %v485_v13, %v281_v15 }
 0x155   : > { %v283_v19 = vadd.f32 %v485_v13, %v282_v17 }
 0x157   : > { %v287_v21 = vsel %vm286_vm6, %v485_v13, %v283_v19 }
 0x158   : > { %v292_v22 = vsel %vm289_vm7, %v291_v20, %v287_v21 }
 0x159   : > { %v294_v23 = vsub.f32 1.0, %v292_v22 }
 0x15b   : > { %v296_v24 = vrot.slane %v294_v23, 7 }
 0x15d   : > { %v299_v25 = vsel %vm298_vm8, %v292_v22, %v296_v24 }
 0x15e   : > { %300 = vst [vmem:[%s206_s24] sm:$0x3] %v299_v25 }
 0x15f   : > { %573 = shalt.err (!%p570_p10)
}
 0x160   : > { %424 = dma.vmem_to_hbm [thread:$0]  (%p712_p7), %s315_s30, 32, %s317_s7, %s302_s16  }
 0x161 PF: > { %s328_s11 = sand.u32 1, %s604_s12   ;;  %p800_p12 = scmp.ge.s32.totalorder %s616_s15, 2 }
 0x162   : > { %s329_s18 = scalar_lea.sflag [#allocation4], %s328_s11 }
 0x163   : > { %p435_p13 = pnand %p800_p12, %p677_p6 }
 0x165   : > { %p436_p0 = pneg %p435_p13 }
 0x167   : > { %599 = dma.done.wait (%p436_p0), %s329_s18, 32  }
 0x168   : > { %601 = vsyncadd (%p436_p0), %s329_s18, 4294967264  ;;  %p17_p3 = scmp.ge.s32.totalorder %s695_s26, 4   ;;  %s801_s12 = smov %s608_s13 }
 0x169   : > { %s802_s13 = smov %s612_s14  ;;  %s803_s14 = smov %s708_s4 }
 0x16a   : > { %s804_s15 = smov %s695_s26  ;;  %19 = sbr.rel (!%p17_p3) target bundleno = 6 (0x6), region = 81 }
 0x16f   :  { %335 = vsyncpa [#allocation3], 1 }
 0x170   :  { %337 = vsyncpa [#allocation3 + $0x1], 1 }
 0x171   :  { %338 = vsyncpa [#allocation6], 1 }
 0x172   :  { %339 = vsyncpa [#allocation4], 1 }
 0x173   :  { %341 = vsyncpa [#allocation4 + $0x1], 1 }

</bundles_post_ra>
